<compile_context>
chip_gen: v6e
topology: v6e:2x2x1
jax: 0.10.0
libtpu: 0.0.40
codegen_flags: <defaults>
</compile_context>

<pallas_src>
import functools

import jax
import jax.numpy as jnp
from jax.experimental import pallas as pl
from jax.experimental.pallas import tpu as pltpu

_LANE = 128
_SUBLANE = 8
_ALIGN = _SUBLANE * _LANE          # pad n to a multiple of 1024 -> rows % 8 == 0

# Dimension-semantics values (string fallbacks keep older jax versions happy).
_PARALLEL = getattr(pltpu, "PARALLEL", "parallel")
_ARBITRARY = getattr(pltpu, "ARBITRARY", "arbitrary")
_CORE_PARALLEL = getattr(pltpu, "CORE_PARALLEL", None)


def _cdiv(a, b):
    return -(-a // b)


def _tpu_config():
    """(default num_cores, default max_tile_rows, core-axis semantics)."""
    try:
        kind = jax.devices()[0].device_kind.lower()
    except Exception:  # pragma: no cover - defensive, e.g. no devices yet
        kind = ""
    if "7" in kind:  # v7x: 2 TensorCores/chip, 3.2 TB/s HBM -> bigger tiles
        core_sem = _CORE_PARALLEL if _CORE_PARALLEL is not None else _PARALLEL
        return 2, 8192, core_sem
    # v5e / v6e: single TensorCore per chip.
    return 1, 4096, _PARALLEL


def _mse_sum_kernel(gt_ref, pr_ref, o_ref, acc_ref, *,
                    valid_rows, tile_rows, steps_per_core):
    core = pl.program_id(0)
    step = pl.program_id(1)

    @pl.when(step == 0)
    def _init():
        acc_ref[...] = jnp.zeros_like(acc_ref)

    # Logical (unclamped) row offset of this block.
    row0 = (core * steps_per_core + step) * tile_rows

    def _accum(d):
        # f32 math regardless of input dtype (mirrors `ground_truth.float()`).
        acc_ref[...] += jnp.sum(d * d, axis=0, keepdims=True)

    # Mask is only needed for the ragged last block and for clamped duplicate
    # blocks (row0 >= valid_rows). Keep the hot path free of iota/compare/select.
    needs_mask = row0 + tile_rows > valid_rows

    @pl.when(jnp.logical_not(needs_mask))
    def _hot():
        _accum(gt_ref[...].astype(jnp.float32) - pr_ref[...].astype(jnp.float32))

    @pl.when(needs_mask)
    def _tail():
        d = gt_ref[...].astype(jnp.float32) - pr_ref[...].astype(jnp.float32)
        rid = row0 + jax.lax.broadcasted_iota(jnp.int32, (tile_rows, _LANE), 0)
        _accum(jnp.where(rid < valid_rows, d, 0.0))

    @pl.when(step == steps_per_core - 1)
    def _finalize():
        o_ref[0] = acc_ref[...]


def rating_prediction_loss(ground_truth, prediction, *,
                           max_tile_rows=None, num_cores=None):
    """JAX/Pallas equivalent of RatingPredictionLoss.forward (scalar f32)."""
    n = prediction.shape[0]
    if n == 0:
        # PyTorch divides by zero here as well.
        return jnp.float32(jnp.nan)

    cfg_cores, cfg_tile, core_sem = _tpu_config()
    if max_tile_rows is None:
        max_tile_rows = cfg_tile
    if num_cores is None:
        num_cores = cfg_cores

    gt, pr = ground_truth, prediction

    # Zero-pad both operands to a (8*128)-element boundary so every block is
    # sublane-aligned; padded elements contribute exactly 0 to the sum.
    # (Free when n is already a multiple of 1024: reshape is a bitcast.)
    pad = (-n) % _ALIGN
    if pad:
        gt = jnp.pad(gt, (0, pad))
        pr = jnp.pad(pr, (0, pad))
    rows = (n + pad) // _LANE
    gt2 = gt.reshape(rows, _LANE)
    pr2 = pr.reshape(rows, _LANE)

    tile_rows = min(max_tile_rows, rows)          # rows and max are multiples of 8
    n_blocks = _cdiv(rows, tile_rows)
    ncore = num_cores if n_blocks >= num_cores else 1
    steps_per_core = _cdiv(n_blocks, ncore)
    axis0_sem = core_sem if ncore > 1 else _ARBITRARY

    def in_map(c, j):
        blk = c * steps_per_core + j
        # Clamp so no DMA window starts past the array; clamped (duplicate)
        # blocks are fully zero-masked inside the kernel.
        return (jnp.minimum(blk, n_blocks - 1), 0)

    kernel = functools.partial(
        _mse_sum_kernel,
        valid_rows=rows,
        tile_rows=tile_rows,
        steps_per_core=steps_per_core,
    )

    bytes_in = gt2.size * gt2.dtype.itemsize + pr2.size * pr2.dtype.itemsize
    partials = pl.pallas_call(
        kernel,
        out_shape=jax.ShapeDtypeStruct((ncore, 1, _LANE), jnp.float32),
        grid_spec=pltpu.PrefetchScalarGridSpec(
            num_scalar_prefetch=0,
            grid=(ncore, steps_per_core),
            in_specs=[
                pl.BlockSpec((tile_rows, _LANE), in_map),
                pl.BlockSpec((tile_rows, _LANE), in_map),
            ],
            out_specs=pl.BlockSpec((1, 1, _LANE), lambda c, j: (c, 0, 0)),
            scratch_shapes=[pltpu.VMEM((1, _LANE), jnp.float32)],
        ),
        compiler_params=pltpu.CompilerParams(
            dimension_semantics=(axis0_sem, _ARBITRARY),
        ),
        cost_estimate=pl.CostEstimate(
            flops=3 * n,
            transcendentals=0,
            bytes_accessed=bytes_in + ncore * _LANE * 4,
        ),
    )(gt2, pr2)

    return jnp.sum(partials) / jnp.float32(n)


if __name__ == "__main__":
    key = jax.random.PRNGKey(0)

    def _check(n_edges, k, **kw):
        k_gt, k_pr = jax.random.split(k)
        gt = jax.random.uniform(k_gt, (n_edges,), jnp.float32) * 5.0
        pr = jax.random.uniform(k_pr, (n_edges,), jnp.float32) * 5.0
        fn = jax.jit(functools.partial(rating_prediction_loss, **kw))
        loss = jax.block_until_ready(fn(gt, pr))
        ref = jnp.sum((gt.astype(jnp.float32) - pr) ** 2) / n_edges
        assert jnp.allclose(loss, ref, rtol=1e-4, atol=1e-4), (n_edges, kw, loss, ref)

    ks = jax.random.split(key, 5)
    _check(1000, ks[0])                                    # padded, single block, fast path
    _check(8192, ks[1])                                    # aligned (no pad), single block
    _check(131372, ks[2])                                  # default tiles, single big block
    _check(131372, ks[3], max_tile_rows=16)                # multi-step + ragged masked tail
    _check(131372, ks[4], max_tile_rows=16, num_cores=2)   # 2-core split + clamped tail block

    print("KERNEL_OK")
</pallas_src>

<mosaic_0001>
module attributes {stable_mosaic.version = 11 : i64} {
  func.func @_mse_sum_kernel(%arg0: i32, %arg1: i32, %arg2: memref<8x128xf32, #tpu.memory_space<vmem>>, %arg3: memref<8x128xf32, #tpu.memory_space<vmem>>, %arg4: memref<1x1x128xf32, #tpu.memory_space<vmem>>, %arg5: memref<1x128xf32, #tpu.memory_space<vmem>>) attributes {dimension_semantics = [#tpu.dimension_semantics<arbitrary>, #tpu.dimension_semantics<arbitrary>], iteration_bounds = array<i64: 1, 1>, scalar_prefetch = 0 : i64, scratch_operands = 1 : i64, tpu.core_type = #tpu.core_type<tc>, window_params = [{transform_indices = @transform_0, window_bounds = array<i64: 8, 128>}, {transform_indices = @transform_1, window_bounds = array<i64: 8, 128>}, {transform_indices = @transform_2, window_bounds = array<i64: 1, 1, 128>}]} {
    %c0_i32 = arith.constant 0 : i32
    %0 = arith.cmpi eq, %arg1, %c0_i32 : i32
    %1 = arith.extui %0 : i1 to i32
    %c0_i32_0 = arith.constant 0 : i32
    %2 = arith.cmpi ne, %1, %c0_i32_0 : i32
    scf.if %2 {
      %cst = arith.constant 0.000000e+00 : f32
      %16 = vector.broadcast %cst : f32 to vector<1x128xf32>
      %c0 = arith.constant 0 : index
      %c0_7 = arith.constant 0 : index
      %17 = vector.load %arg5[%c0, %c0_7] : memref<1x128xf32, #tpu.memory_space<vmem>>, vector<1x128xf32>
      tpu.vector_store %arg5[%c0, %c0_7], %16 {strides = array<i32>} : memref<1x128xf32, #tpu.memory_space<vmem>>, vector<1x128xf32>,
    } else {
    }
    %c1_i32 = arith.constant 1 : i32
    %3 = arith.muli %arg0, %c1_i32 : i32
    %4 = arith.addi %3, %arg1 : i32
    %c8_i32 = arith.constant 8 : i32
    %5 = arith.muli %4, %c8_i32 : i32
    %c8_i32_1 = arith.constant 8 : i32
    %6 = arith.addi %5, %c8_i32_1 : i32
    %c8_i32_2 = arith.constant 8 : i32
    %7 = arith.cmpi sgt, %6, %c8_i32_2 : i32
    %true = arith.constant true
    %8 = arith.xori %7, %true : i1
    %9 = arith.extui %8 : i1 to i32
    %c0_i32_3 = arith.constant 0 : i32
    %10 = arith.cmpi ne, %9, %c0_i32_3 : i32
    scf.if %10 {
      %c0 = arith.constant 0 : index
      %c0_7 = arith.constant 0 : index
      %16 = vector.load %arg2[%c0, %c0_7] : memref<8x128xf32, #tpu.memory_space<vmem>>, vector<8x128xf32>
      %c0_8 = arith.constant 0 : index
      %c0_9 = arith.constant 0 : index
      %17 = vector.load %arg3[%c0_8, %c0_9] : memref<8x128xf32, #tpu.memory_space<vmem>>, vector<8x128xf32>
      %18 = arith.subf %16, %17 : vector<8x128xf32>
      %c0_10 = arith.constant 0 : index
      %c0_11 = arith.constant 0 : index
      %19 = vector.load %arg5[%c0_10, %c0_11] : memref<1x128xf32, #tpu.memory_space<vmem>>, vector<1x128xf32>
      %20 = arith.mulf %18, %18 : vector<8x128xf32>
      %cst = arith.constant dense<0.000000e+00> : vector<128xf32>
      %21 = vector.multi_reduction <add>, %20, %cst [0] : vector<8x128xf32> to vector<128xf32>
      %22 = vector.shape_cast %21 : vector<128xf32> to vector<1x128xf32>
      %23 = arith.addf %19, %22 : vector<1x128xf32>
      %c0_12 = arith.constant 0 : index
      %c0_13 = arith.constant 0 : index
      %24 = vector.load %arg5[%c0_12, %c0_13] : memref<1x128xf32, #tpu.memory_space<vmem>>, vector<1x128xf32>
      tpu.vector_store %arg5[%c0_12, %c0_13], %23 {strides = array<i32>} : memref<1x128xf32, #tpu.memory_space<vmem>>, vector<1x128xf32>,
    } else {
    }
    %11 = arith.extui %7 : i1 to i32
    %c0_i32_4 = arith.constant 0 : i32
    %12 = arith.cmpi ne, %11, %c0_i32_4 : i32
    scf.if %12 {
      %c0 = arith.constant 0 : index
      %c0_7 = arith.constant 0 : index
      %16 = vector.load %arg2[%c0, %c0_7] : memref<8x128xf32, #tpu.memory_space<vmem>>, vector<8x128xf32>
      %c0_8 = arith.constant 0 : index
      %c0_9 = arith.constant 0 : index
      %17 = vector.load %arg3[%c0_8, %c0_9] : memref<8x128xf32, #tpu.memory_space<vmem>>, vector<8x128xf32>
      %18 = arith.subf %16, %17 : vector<8x128xf32>
      %19 = tpu.iota {dimensions = array<i32: 0>} : vector<8x128xi32>
      %20 = vector.broadcast %5 : i32 to vector<8x128xi32>
      %21 = arith.addi %20, %19 : vector<8x128xi32>
      %c8_i32_10 = arith.constant 8 : i32
      %22 = vector.broadcast %c8_i32_10 : i32 to vector<8x128xi32>
      %23 = arith.cmpi slt, %21, %22 : vector<8x128xi32>
      %cst = arith.constant 0.000000e+00 : f32
      %24 = vector.broadcast %cst : f32 to vector<8x128xf32>
      %25 = arith.select %23, %18, %24 : vector<8x128xi1>, vector<8x128xf32>
      %c0_11 = arith.constant 0 : index
      %c0_12 = arith.constant 0 : index
      %26 = vector.load %arg5[%c0_11, %c0_12] : memref<1x128xf32, #tpu.memory_space<vmem>>, vector<1x128xf32>
      %27 = arith.mulf %25, %25 : vector<8x128xf32>
      %cst_13 = arith.constant dense<0.000000e+00> : vector<128xf32>
      %28 = vector.multi_reduction <add>, %27, %cst_13 [0] : vector<8x128xf32> to vector<128xf32>
      %29 = vector.shape_cast %28 : vector<128xf32> to vector<1x128xf32>
      %30 = arith.addf %26, %29 : vector<1x128xf32>
      %c0_14 = arith.constant 0 : index
      %c0_15 = arith.constant 0 : index
      %31 = vector.load %arg5[%c0_14, %c0_15] : memref<1x128xf32, #tpu.memory_space<vmem>>, vector<1x128xf32>
      tpu.vector_store %arg5[%c0_14, %c0_15], %30 {strides = array<i32>} : memref<1x128xf32, #tpu.memory_space<vmem>>, vector<1x128xf32>,
    } else {
    }
    %c0_i32_5 = arith.constant 0 : i32
    %13 = arith.cmpi eq, %arg1, %c0_i32_5 : i32
    %14 = arith.extui %13 : i1 to i32
    %c0_i32_6 = arith.constant 0 : i32
    %15 = arith.cmpi ne, %14, %c0_i32_6 : i32
    scf.if %15 {
      %c0 = arith.constant 0 : index
      %c0_7 = arith.constant 0 : index
      %16 = vector.load %arg5[%c0, %c0_7] : memref<1x128xf32, #tpu.memory_space<vmem>>, vector<1x128xf32>
      %c0_8 = arith.constant 0 : index
      %c0_9 = arith.constant 0 : index
      %c0_10 = arith.constant 0 : index
      %17 = vector.load %arg4[%c0_8, %c0_9, %c0_10] : memref<1x1x128xf32, #tpu.memory_space<vmem>>, vector<1x1x128xf32>
      %18 = vector.shape_cast %17 : vector<1x1x128xf32> to vector<1x128xf32>
      %19 = vector.shape_cast %16 : vector<1x128xf32> to vector<1x1x128xf32>
      tpu.vector_store %arg4[%c0_8, %c0_9, %c0_10], %19 {strides = array<i32>} : memref<1x1x128xf32, #tpu.memory_space<vmem>>, vector<1x1x128xf32>,
    } else {
    }
    return
  }
  func.func @transform_0(%arg0: i32, %arg1: i32) -> (i32, i32) {
    %c1_i32 = arith.constant 1 : i32
    %0 = arith.muli %arg0, %c1_i32 : i32
    %1 = arith.addi %0, %arg1 : i32
    %c0_i32 = arith.constant 0 : i32
    %2 = arith.minsi %1, %c0_i32 : i32
    %c0_i32_0 = arith.constant 0 : i32
    %c0_i32_1 = arith.constant 0 : i32
    return %2, %c0_i32_0 : i32, i32
  }
  func.func @transform_1(%arg0: i32, %arg1: i32) -> (i32, i32) {
    %c1_i32 = arith.constant 1 : i32
    %0 = arith.muli %arg0, %c1_i32 : i32
    %1 = arith.addi %0, %arg1 : i32
    %c0_i32 = arith.constant 0 : i32
    %2 = arith.minsi %1, %c0_i32 : i32
    %c0_i32_0 = arith.constant 0 : i32
    %c0_i32_1 = arith.constant 0 : i32
    return %2, %c0_i32_0 : i32, i32
  }
  func.func @transform_2(%arg0: i32, %arg1: i32) -> (i32, i32, i32) {
    %c0_i32 = arith.constant 0 : i32
    %c0_i32_0 = arith.constant 0 : i32
    %c0_i32_1 = arith.constant 0 : i32
    return %arg0, %c0_i32, %c0_i32_0 : i32, i32, i32
  }
}

</mosaic_0001>

<bundles_post_ra>
// kernel: rating_prediction_loss.1
= control target key start
LH: loop header
LB: loop body
LE: loop exit
PB: predicated region body
PF: predicated region fallthrough
CT: control target
= control target key end

     0   :  { %v135_v0 = vmov 0.0   ;;  %s160_s0 = inlined_call_operand.vmem [shape: f32[8,128], index: 0, kind: input, shape index: {}]   ;;  %s161_s1 = inlined_call_operand.vmem [shape: f32[8,128], index: 1, kind: input, shape index: {}]   ;;  %s162_s2 = inlined_call_operand.vmem [shape: f32[1,1,128], index: 2, kind: output, shape index: {}]  }
   0x1   :  { %69 = vst [vmem:[#allocation2] sm:$0x1] %v135_v0  ;;  %v78_v1 = vld [vmem:[%s160_s0] sm:$0xff] }
   0x2   :  { %v79_v2 = vld [vmem:[%s161_s1] sm:$0xff] }
   0x3   :  { %v80_v3 = vsub.f32 %v78_v1, %v79_v2 }
   0x5   :  { %v82_v4 = vmul.f32 %v80_v3, %v80_v3 }
   0x7   :  { %v83_v5 = vrot.slane %v82_v4, 4 }
   0x8   :  { %v81_v10 = vld [vmem:[#allocation2] sm:$0x1] }
   0x9   :  { %v84_v6 = vadd.f32 %v83_v5, %v82_v4 }
   0xb   :  { %v85_v7 = vrot.slane %v84_v6, 2 }
   0xd   :  { %v86_v8 = vadd.f32 %v85_v7, %v84_v6 }
   0xf   :  { %v87_v9 = vrot.slane %v86_v8, 1 }
  0x11   :  { %v88_v11 = vadd.f32 %v87_v9, %v86_v8 }
  0x13   :  { %v89_v12 = vadd.f32 %v88_v11, %v81_v10 }
  0x15   :  { %90 = vst [vmem:[#allocation2] sm:$0x1] %v89_v12 }
  0x1c   :  { %v116_v13 = vld [vmem:[#allocation2] sm:$0x1] }
  0x1d   :  { %117 = vst [vmem:[%s162_s2] sm:$0x1] %v116_v13 }

</bundles_post_ra>
